<compile_context>
chip_gen: v6e
topology: v6e:2x2x1
jax: 0.10.0
libtpu: 0.0.40
codegen_flags: <defaults>
</compile_context>

<pallas_src>
import functools

import jax
import jax.numpy as jnp
from jax.experimental import pallas as pl
from jax.experimental.pallas import tpu as pltpu


_TN = 32                      # gaussians per output block (sublane dim, mult of 8)
_TP_MAX = 64 * 1024           # spatial tile cap (lane dim, multiple of 128)
_PARAMS_RESIDENT_BYTES = 2 * 1024 * 1024   # cap on fully-resident (padded) params
_VMEM_LIMIT = 32 * 1024 * 1024             # covers ~21 MiB peak blocks on all gens


def _gaussian3d_kernel(params_ref, coords_ref, out_ref, *, params_resident):
    """One grid step: _TN gaussians x TP voxels.

    params_ref: resident -> (num_g, TN, 8), streamed -> (1, TN, 8)
                columns = [amp, cz, cy, cx, -0.5/sz^2, -0.5/sy^2, -0.5/sx^2, 0]
    coords_ref: (3, TP)  rows = [z, y, x]
    out_ref:    (TN, TP)
    """
    if params_resident:
        prm = params_ref[pl.program_id(1)]      # (TN, 8), single VMEM read
    else:
        prm = params_ref[0]                     # (TN, 8)

    amp = prm[:, 0:1]                           # (TN, 1) -> lane-broadcast
    cz = prm[:, 1:2]
    cy = prm[:, 2:3]
    cx = prm[:, 3:4]
    az = prm[:, 4:5]                            # -0.5 / sigma_z^2 (hoisted)
    ay = prm[:, 5:6]
    ax = prm[:, 6:7]

    z = coords_ref[0:1, :]                      # (1, TP) -> sublane-broadcast
    y = coords_ref[1:2, :]
    x = coords_ref[2:3, :]

    dz = z - cz                                 # (TN, TP)
    dy = y - cy
    dx = x - cx
    expo = dz * dz * az + dy * dy * ay + dx * dx * ax
    out_ref[...] = (amp * jnp.exp(expo)).astype(out_ref.dtype)


@functools.partial(jax.jit, static_argnames=("out_dtype",))
def gaussian3d_forward(grid, amplitude, center_z, center_y, center_x,
                       sigma_z, sigma_y, sigma_x, *, out_dtype=jnp.float32):
    """grid: (d, h, w, 3) in zyx order; params: (N,) each.

    Returns (N, d, h, w) in out_dtype (default float32, matching torch).
    """
    d, h, w, _ = grid.shape
    n = amplitude.shape[0]
    p = d * h * w
    f32 = jnp.float32

    # ---- spatial tiling (lane-dense, multiple of 128) ----
    p128 = ((p + 127) // 128) * 128
    tp = min(p128, _TP_MAX)
    num_p = pl.cdiv(p, tp)
    p_pad = num_p * tp

    # ---- gaussian tiling (sublane packing) ----
    n_pad = ((n + _TN - 1) // _TN) * _TN
    num_g = n_pad // _TN

    # Fused coord rows (3, p_pad), zyx order.  Explicit zero-pad of the ragged
    # tail keeps the (discarded) padded-lane compute finite/deterministic.
    coords = grid.astype(f32).reshape(p, 3).T              # (3, P)
    if p_pad != p:
        coords = jnp.pad(coords, ((0, 0), (0, p_pad - p)))  # (3, P_pad)

    # Fused param table (num_g, TN, 8); the per-gaussian divisions happen here
    # (once per gaussian, not once per voxel).  Zero-padded rows give amp=0,
    # a=0 -> finite output 0 (and are masked off the exact-shaped output anyway).
    az = -0.5 / (sigma_z.astype(f32) ** 2)
    ay = -0.5 / (sigma_y.astype(f32) ** 2)
    ax = -0.5 / (sigma_x.astype(f32) ** 2)
    params = jnp.stack(
        [amplitude.astype(f32), center_z.astype(f32), center_y.astype(f32),
         center_x.astype(f32), az, ay, ax, jnp.zeros((n,), f32)], axis=1)  # (N, 8)
    if n_pad != n:
        params = jnp.pad(params, ((0, n_pad - n), (0, 0)))
    params = params.reshape(num_g, _TN, 8)

    # Keep the whole param table VMEM-resident (constant index_map) unless it
    # is large; the padded VMEM footprint is num_g * TN * 128 * 4 bytes.
    params_resident = (num_g * _TN * 128 * 4) <= _PARAMS_RESIDENT_BYTES
    if params_resident:
        params_spec = pl.BlockSpec((num_g, _TN, 8), lambda pi, gi: (0, 0, 0))
    else:
        params_spec = pl.BlockSpec((1, _TN, 8), lambda pi, gi: (gi, 0, 0))

    kernel = functools.partial(_gaussian3d_kernel,
                               params_resident=params_resident)

    out_flat = pl.pallas_call(
        kernel,
        # Exact output shape: ragged last blocks are masked by Pallas, so no
        # post-kernel slice copy; the reshape below is metadata-only.
        out_shape=jax.ShapeDtypeStruct((n, p), out_dtype),
        # p-tile axis OUTER, gaussian-block axis INNER: coord block index
        # depends only on the outer axis -> fetched once, reused across all
        # gaussian blocks; params are resident -> fetched once total.
        grid=(num_p, num_g),
        in_specs=[
            params_spec,                                   # params (resident)
            pl.BlockSpec((3, tp), lambda pi, gi: (0, pi)),  # coords (reused)
        ],
        out_specs=pl.BlockSpec((_TN, tp), lambda pi, gi: (gi, pi)),
        compiler_params=pltpu.CompilerParams(
            dimension_semantics=("parallel", "parallel"),
            vmem_limit_bytes=_VMEM_LIMIT),
    )(params, coords)

    return out_flat.reshape(n, d, h, w)


def _reference(grid, amplitude, center_z, center_y, center_x,
               sigma_z, sigma_y, sigma_x):
    """Pure-JAX reference mirroring the torch einops implementation."""
    gx = grid[..., 2][..., None]  # (d,h,w,1)
    gy = grid[..., 1][..., None]
    gz = grid[..., 0][..., None]
    amp = amplitude[None, None, None, :]
    cx = center_x[None, None, None, :]
    cy = center_y[None, None, None, :]
    cz = center_z[None, None, None, :]
    sx = sigma_x[None, None, None, :]
    sy = sigma_y[None, None, None, :]
    sz = sigma_z[None, None, None, :]
    g = amp * jnp.exp(-((gx - cx) ** 2 / (2 * sx ** 2)
                        + (gy - cy) ** 2 / (2 * sy ** 2)
                        + (gz - cz) ** 2 / (2 * sz ** 2)))
    return jnp.transpose(g, (3, 0, 1, 2))


if __name__ == "__main__":
    key = jax.random.PRNGKey(0)
    k1, k2, k3, k4 = jax.random.split(key, 4)

    D, H, W = 8, 8, 8
    N = 4  # number of gaussians (parameter shape (N,))

    # deterministic parameter init (synthetic, no checkpoint)
    amplitude = jnp.linspace(0.5, 2.0, N, dtype=jnp.float32)
    center_z = jax.random.uniform(k1, (N,), jnp.float32, 1.0, float(D - 2))
    center_y = jax.random.uniform(k2, (N,), jnp.float32, 1.0, float(H - 2))
    center_x = jax.random.uniform(k3, (N,), jnp.float32, 1.0, float(W - 2))
    sigma_z = jnp.full((N,), 1.5, jnp.float32)
    sigma_y = jnp.full((N,), 1.0, jnp.float32)
    sigma_x = jnp.full((N,), 2.0, jnp.float32)

    # grid of zyx coordinates, shape (d, h, w, 3)
    zz, yy, xx = jnp.meshgrid(
        jnp.arange(D, dtype=jnp.float32),
        jnp.arange(H, dtype=jnp.float32),
        jnp.arange(W, dtype=jnp.float32),
        indexing="ij",
    )
    grid = jnp.stack([zz, yy, xx], axis=-1)
    # jitter to make coordinates non-trivial (non-separable)
    grid = grid + 0.01 * jax.random.normal(k4, grid.shape, jnp.float32)

    out = gaussian3d_forward(grid, amplitude, center_z, center_y, center_x,
                             sigma_z, sigma_y, sigma_x)
    out = jax.block_until_ready(out)

    ref = _reference(grid, amplitude, center_z, center_y, center_x,
                     sigma_z, sigma_y, sigma_x)
    assert out.shape == (N, D, H, W), out.shape
    assert jnp.allclose(out, ref, atol=1e-5, rtol=1e-5), \
        float(jnp.max(jnp.abs(out - ref)))

    print("KERNEL_OK")
</pallas_src>

<mosaic_0001>
module attributes {stable_mosaic.version = 11 : i64} {
  func.func @_gaussian3d_kernel(%arg0: i32, %arg1: i32, %arg2: memref<1x32x8xf32, #tpu.memory_space<vmem>>, %arg3: memref<3x512xf32, #tpu.memory_space<vmem>>, %arg4: memref<32x512xf32, #tpu.memory_space<vmem>>) attributes {dimension_semantics = [#tpu.dimension_semantics<parallel>, #tpu.dimension_semantics<parallel>], iteration_bounds = array<i64: 1, 1>, scalar_prefetch = 0 : i64, scratch_operands = 0 : i64, tpu.core_type = #tpu.core_type<tc>, window_params = [{pipeline_mode = #tpu.pipeline_mode<synchronous>, transform_indices = @transform_0, window_bounds = array<i64: 1, 32, 8>}, {transform_indices = @transform_1, window_bounds = array<i64: 3, 512>}, {transform_indices = @transform_2, window_bounds = array<i64: 32, 512>}]} {
    %0 = arith.index_cast %arg1 : i32 to index
    %c0 = arith.constant 0 : index
    %c0_0 = arith.constant 0 : index
    %1 = vector.load %arg2[%0, %c0, %c0_0] : memref<1x32x8xf32, #tpu.memory_space<vmem>>, vector<1x32x8xf32>
    %2 = vector.shape_cast %1 : vector<1x32x8xf32> to vector<32x8xf32>
    %3 = vector.extract_strided_slice %2 {offsets = [0, 0], sizes = [32, 1], strides = [1, 1]} : vector<32x8xf32> to vector<32x1xf32>
    %4 = vector.extract_strided_slice %2 {offsets = [0, 1], sizes = [32, 1], strides = [1, 1]} : vector<32x8xf32> to vector<32x1xf32>
    %5 = vector.extract_strided_slice %2 {offsets = [0, 2], sizes = [32, 1], strides = [1, 1]} : vector<32x8xf32> to vector<32x1xf32>
    %6 = vector.extract_strided_slice %2 {offsets = [0, 3], sizes = [32, 1], strides = [1, 1]} : vector<32x8xf32> to vector<32x1xf32>
    %7 = vector.extract_strided_slice %2 {offsets = [0, 4], sizes = [32, 1], strides = [1, 1]} : vector<32x8xf32> to vector<32x1xf32>
    %8 = vector.extract_strided_slice %2 {offsets = [0, 5], sizes = [32, 1], strides = [1, 1]} : vector<32x8xf32> to vector<32x1xf32>
    %9 = vector.extract_strided_slice %2 {offsets = [0, 6], sizes = [32, 1], strides = [1, 1]} : vector<32x8xf32> to vector<32x1xf32>
    %c0_1 = arith.constant 0 : index
    %c0_2 = arith.constant 0 : index
    %10 = vector.load %arg3[%c0_1, %c0_2] : memref<3x512xf32, #tpu.memory_space<vmem>>, vector<1x512xf32>
    %c1 = arith.constant 1 : index
    %c0_3 = arith.constant 0 : index
    %11 = vector.load %arg3[%c1, %c0_3] : memref<3x512xf32, #tpu.memory_space<vmem>>, vector<1x512xf32>
    %c2 = arith.constant 2 : index
    %c0_4 = arith.constant 0 : index
    %12 = vector.load %arg3[%c2, %c0_4] : memref<3x512xf32, #tpu.memory_space<vmem>>, vector<1x512xf32>
    %13 = vector.broadcast %10 : vector<1x512xf32> to vector<32x512xf32>
    %14 = vector.broadcast %4 : vector<32x1xf32> to vector<32x512xf32>
    %15 = arith.subf %13, %14 : vector<32x512xf32>
    %16 = vector.broadcast %11 : vector<1x512xf32> to vector<32x512xf32>
    %17 = vector.broadcast %5 : vector<32x1xf32> to vector<32x512xf32>
    %18 = arith.subf %16, %17 : vector<32x512xf32>
    %19 = vector.broadcast %12 : vector<1x512xf32> to vector<32x512xf32>
    %20 = vector.broadcast %6 : vector<32x1xf32> to vector<32x512xf32>
    %21 = arith.subf %19, %20 : vector<32x512xf32>
    %22 = arith.mulf %15, %15 : vector<32x512xf32>
    %23 = vector.broadcast %7 : vector<32x1xf32> to vector<32x512xf32>
    %24 = arith.mulf %22, %23 : vector<32x512xf32>
    %25 = arith.mulf %18, %18 : vector<32x512xf32>
    %26 = vector.broadcast %8 : vector<32x1xf32> to vector<32x512xf32>
    %27 = arith.mulf %25, %26 : vector<32x512xf32>
    %28 = arith.addf %24, %27 : vector<32x512xf32>
    %29 = arith.mulf %21, %21 : vector<32x512xf32>
    %30 = vector.broadcast %9 : vector<32x1xf32> to vector<32x512xf32>
    %31 = arith.mulf %29, %30 : vector<32x512xf32>
    %32 = arith.addf %28, %31 : vector<32x512xf32>
    %33 = math.exp %32 : vector<32x512xf32>
    %34 = vector.broadcast %3 : vector<32x1xf32> to vector<32x512xf32>
    %35 = arith.mulf %34, %33 : vector<32x512xf32>
    %c0_5 = arith.constant 0 : index
    %c0_6 = arith.constant 0 : index
    %36 = vector.load %arg4[%c0_5, %c0_6] : memref<32x512xf32, #tpu.memory_space<vmem>>, vector<32x512xf32>
    tpu.vector_store %arg4[%c0_5, %c0_6], %35 {strides = array<i32>} : memref<32x512xf32, #tpu.memory_space<vmem>>, vector<32x512xf32>,
    return
  }
  func.func @transform_0(%arg0: i32, %arg1: i32) -> (i32, i32, i32) {
    %c0_i32 = arith.constant 0 : i32
    %c0_i32_0 = arith.constant 0 : i32
    %c0_i32_1 = arith.constant 0 : i32
    %c0_i32_2 = arith.constant 0 : i32
    return %c0_i32, %c0_i32_0, %c0_i32_1 : i32, i32, i32
  }
  func.func @transform_1(%arg0: i32, %arg1: i32) -> (i32, i32) {
    %c0_i32 = arith.constant 0 : i32
    %c0_i32_0 = arith.constant 0 : i32
    return %c0_i32, %arg0 : i32, i32
  }
  func.func @transform_2(%arg0: i32, %arg1: i32) -> (i32, i32) {
    %c0_i32 = arith.constant 0 : i32
    return %arg1, %arg0 : i32, i32
  }
}

</mosaic_0001>

<bundles_post_ra>
// kernel: gaussian3d_forward.1
= control target key start
LH: loop header
LB: loop body
LE: loop exit
PB: predicated region body
PF: predicated region fallthrough
CT: control target
= control target key end

     0   :  { %v541_v1 = vmov 3   ;;  %v542_v2 = vmov 1   ;;  %v543_v3 = vmov 4   ;;  %v544_v4 = vmov 2   ;;  %s581_s0 = inlined_call_operand.vmem [shape: f32[1,32,8], index: 0, kind: input, shape index: {}]   ;;  %s582_s1 = inlined_call_operand.vmem [shape: f32[3,512], index: 1, kind: input, shape index: {}]   ;;  %s583_s2 = inlined_call_operand.vmem [shape: f32[4,512], index: 2, kind: output, shape index: {}]  }
   0x1   :  { %v13_v0 = vld [vmem:[%s581_s0] sm:$0xff]  ;;  %527 = vset.pattern.permute.xlu1 %v541_v1  ;;  %525 = vset.pattern.permute.xlu0 %v542_v2  ;;  %v545_v5 = vmov 5   ;;  %v546_v6 = vmov 6   ;;  %v547_v7 = vmov 0   ;;  %v23_v8 = vlaneseq }
   0x2   :  { %154 = vperm.xlu1 %527, %v13_v0   ;;  %45 = vperm.xlu0 %525, %v13_v0   ;;  %v17_v14 = vld [vmem:[%s582_s1] ss:$4 sm:$0xf]  ;;  %v517_v15 = vld [vmem:[%s582_s1 + $0x2] ss:$4 sm:$0xf] }
   0x3   :  { %v24_v9 = vshrl.u32 %v23_v8, 7  ;;  %v516_v26 = vld [vmem:[%s582_s1 + $0x1] ss:$4 sm:$0xf] }
   0x5   :  { %v25_v10 = vsub.s32 0, %v24_v9  ;;  %v29_v11 = vsub.s32 1, %v24_v9  ;;  %v33_v12 = vsub.s32 2, %v24_v9  ;;  %v37_v13 = vsub.s32 3, %v24_v9 }
   0x6   :  { %528 = vset.pattern.permute.xlu1 %v543_v3  ;;  %526 = vset.pattern.permute.xlu0 %v544_v4 }
   0x7   :  { %202 = vperm.xlu1 %528, %v13_v0   ;;  %101 = vperm.xlu0 %526, %v13_v0   ;;  %v26_v16 = vrot.slane %v17_v14, %v25_v10  ;;  %v30_v17 = vrot.slane %v17_v14, %v29_v11  ;;  %v34_v18 = vrot.slane %v17_v14, %v33_v12 }
   0x8   :  { %v38_v19 = vrot.slane %v17_v14, %v37_v13  ;;  %v136_v20 = vrot.slane %v517_v15, %v25_v10  ;;  %v140_v21 = vrot.slane %v517_v15, %v29_v11  ;;  %v144_v22 = vrot.slane %v517_v15, %v33_v12 }
   0x9   :  { %v148_v23 = vrot.slane %v517_v15, %v37_v13  ;;  %v83_v31 = vrot.slane %v516_v26, %v25_v10  ;;  %v87_v32 = vrot.slane %v516_v26, %v29_v11  ;;  %v91_v33 = vrot.slane %v516_v26, %v33_v12 }
   0xa   :  { %v95_v34 = vrot.slane %v516_v26, %v37_v13 }
   0xb   :  { %529 = vset.pattern.permute.xlu1 %v545_v5  ;;  %530 = vset.pattern.permute.xlu0 %v546_v6 }
   0xc   :  { %250 = vperm.xlu1 %529, %v13_v0   ;;  %314 = vperm.xlu0 %530, %v13_v0  }
  0x10   :  { %531 = vset.pattern.permute.xlu1 %v547_v7  ;;  %532 = vset.pattern.permute.xlu0 %v547_v7 }
  0x11   :  { %394 = vperm.xlu1 %531, %v13_v0  }
  0x7d   :  { %v155_v24 = vpop.permute.xlu1 %154  ;;  %v46_v25 = vpop.permute.xlu0 %45 }
  0x7e   :  { %v63_v27 = vsub.f32 %v26_v16, %v46_v25  ;;  %v64_v28 = vsub.f32 %v30_v17, %v46_v25  ;;  %v65_v29 = vsub.f32 %v34_v18, %v46_v25  ;;  %v66_v30 = vsub.f32 %v38_v19, %v46_v25 }
  0x7f   :  { %v169_v35 = vsub.f32 %v136_v20, %v155_v24  ;;  %v170_v36 = vsub.f32 %v140_v21, %v155_v24  ;;  %v171_v37 = vsub.f32 %v144_v22, %v155_v24  ;;  %v172_v38 = vsub.f32 %v148_v23, %v155_v24 }
  0x80   :  { %v185_v41 = vmul.f32 %v63_v27, %v63_v27  ;;  %v186_v42 = vmul.f32 %v64_v28, %v64_v28  ;;  %v187_v43 = vmul.f32 %v65_v29, %v65_v29  ;;  %v188_v44 = vmul.f32 %v66_v30, %v66_v30 }
  0x81   :  { %v297_v49 = vmul.f32 %v169_v35, %v169_v35  ;;  %v298_v50 = vmul.f32 %v170_v36, %v170_v36  ;;  %v299_v51 = vmul.f32 %v171_v37, %v171_v37  ;;  %v300_v52 = vmul.f32 %v172_v38, %v172_v38 }
  0x82   :  { %v203_v39 = vpop.permute.xlu1 %202  ;;  %v102_v40 = vpop.permute.xlu0 %101 }
  0x83   :  { %v116_v45 = vsub.f32 %v83_v31, %v102_v40  ;;  %v117_v46 = vsub.f32 %v87_v32, %v102_v40  ;;  %v118_v47 = vsub.f32 %v91_v33, %v102_v40  ;;  %v119_v48 = vsub.f32 %v95_v34, %v102_v40 }
  0x84   :  { %v217_v57 = vmul.f32 %v203_v39, %v185_v41  ;;  %v218_v58 = vmul.f32 %v203_v39, %v186_v42  ;;  %v219_v59 = vmul.f32 %v203_v39, %v187_v43  ;;  %v220_v60 = vmul.f32 %v203_v39, %v188_v44 }
  0x85   :  { %v233_v53 = vmul.f32 %v116_v45, %v116_v45  ;;  %v234_v54 = vmul.f32 %v117_v46, %v117_v46  ;;  %v235_v55 = vmul.f32 %v118_v47, %v118_v47  ;;  %v236_v56 = vmul.f32 %v119_v48, %v119_v48 }
  0x87   :  { %v251_v61 = vpop.permute.xlu1 %250  ;;  %v315_v62 = vpop.permute.xlu0 %314 }
  0x88   :  { %v265_v63 = vmul.f32 %v251_v61, %v233_v53  ;;  %v266_v0 = vmul.f32 %v251_v61, %v234_v54  ;;  %v267_v1 = vmul.f32 %v251_v61, %v235_v55  ;;  %v268_v2 = vmul.f32 %v251_v61, %v236_v56 }
  0x89   :  { %v329_v3 = vmul.f32 %v315_v62, %v297_v49  ;;  %v330_v4 = vmul.f32 %v315_v62, %v298_v50  ;;  %v331_v5 = vmul.f32 %v315_v62, %v299_v51  ;;  %v332_v6 = vmul.f32 %v315_v62, %v300_v52 }
  0x8a   :  { %v281_v7 = vadd.f32 %v265_v63, %v217_v57  ;;  %v282_v8 = vadd.f32 %v266_v0, %v218_v58  ;;  %v283_v9 = vadd.f32 %v267_v1, %v219_v59  ;;  %v284_v10 = vadd.f32 %v268_v2, %v220_v60 }
  0x8c   :  { %v345_v11 = vadd.f32 %v329_v3, %v281_v7  ;;  %v346_v12 = vadd.f32 %v330_v4, %v282_v8  ;;  %v347_v13 = vadd.f32 %v331_v5, %v283_v9  ;;  %v348_v14 = vadd.f32 %v332_v6, %v284_v10  ;;  %v395_v19 = vpop.permute.xlu1 %394 }
  0x8e   :  { %v361_v15 = vmul.f32 1.442695, %v345_v11  ;;  %v363_v16 = vmul.f32 1.442695, %v346_v12  ;;  %v365_v17 = vmul.f32 1.442695, %v347_v13 }
  0x8f   :  { %v367_v18 = vmul.f32 1.442695, %v348_v14 }
  0x90   :  { %533 = vpow2.f32 %v361_v15 }
  0x91   :  { %535 = vpow2.f32 %v363_v16 }
  0x92   :  { %537 = vpow2.f32 %v365_v17 }
  0x93   :  { %539 = vpow2.f32 %v367_v18 }
  0x9d   :  { %v534_v20 = vpop.eup %533 }
  0x9e   :  { %v536_v21 = vpop.eup %535  ;;  %v409_v22 = vmul.f32 %v534_v20, %v395_v19 }
  0x9f   :  { %v538_v23 = vpop.eup %537  ;;  %v410_v24 = vmul.f32 %v536_v21, %v395_v19 }
  0xa0   :  { %v540_v25 = vpop.eup %539  ;;  %v411_v26 = vmul.f32 %v538_v23, %v395_v19 }
  0xa1   :  { %v412_v27 = vmul.f32 %v540_v25, %v395_v19  ;;  %v441_v28 = vcombine.low %v409_v22, %v410_v24 }
  0xa3   :  { %v443_v29 = vcombine.low %v411_v26, %v412_v27  ;;  %504 = vst [vmem:[%s583_s2] sm:$0xff] %v441_v28 }
  0xa5   :  { %506 = vst [vmem:[%s583_s2 + $0x8] sm:$0xff] %v443_v29 }

</bundles_post_ra>
